<compile_context>
chip_gen: v5e
topology: v5e:2x2
jax: 0.10.0
libtpu: 0.0.40
codegen_flags: <defaults>
</compile_context>

<pallas_src>
import functools

import jax
import jax.numpy as jnp
from jax.experimental import pallas as pl
from jax.experimental.pallas import tpu as pltpu


_LANES = 128
_MAX_BLOCK_ROWS = 4096  # 4096 x 128 x 4B = 2 MiB per f32 operand block


def _sqerr_kernel(x_ref, t_ref, o_ref, acc_ref, *,
                  block_rows, steps_per_core, rows_total, need_mask):
    """Streaming sum((t-x)^2) into a vreg-shaped (8,128) accumulator.

    Grid = (ncores, steps_per_core).  Axis 0 is "parallel" (megacore split on
    v7x, serial elsewhere); axis 1 walks (block_rows, 128) row tiles.  Each
    core writes its own (1, 8, 128) partial-sum block; the wrapper finishes
    the reduction.
    """
    step = pl.program_id(1)

    @pl.when(step == 0)
    def _init():
        acc_ref[...] = jnp.zeros_like(acc_ref)

    # Upcast immediately after load (v5e VPU has no bf16 path); inputs ship
    # over HBM in their narrow native dtype.
    x = x_ref[...].astype(jnp.float32)
    t = t_ref[...].astype(jnp.float32)
    d = t - x
    sq = d * d

    if need_mask:
        # Row overhang of the (possibly partial) last block: discard with a
        # select on the *nominal* global row index (garbage never survives).
        core = pl.program_id(0)
        base = (core * steps_per_core + step) * block_rows
        row = base + jax.lax.broadcasted_iota(jnp.int32, (block_rows, _LANES), 0)
        sq = jnp.where(row < rows_total, sq, 0.0)

    # Per-step partial sums stay on the VPU (no per-step XLU reduce, no scalar
    # loop-carried dependence); also better f32 accumulation accuracy.
    acc_ref[...] += sq.reshape(block_rows // 8, 8, _LANES).sum(axis=0)

    @pl.when(step == steps_per_core - 1)
    def _fin():
        o_ref[...] = acc_ref[...].reshape(o_ref.shape)


def _sublane_multiple(dtype):
    # f32 -> 8, bf16/f16 -> 16, int8/fp8 -> 32 (packed-sublane tiling).
    return {4: 8, 2: 16, 1: 32}.get(jnp.dtype(dtype).itemsize, 8)


def _round_up(v, m):
    return ((v + m - 1) // m) * m


def custom_loss(inputs, targets, neu_activ, _lambda):
    """loss = mean((targets - inputs)**2) / 2 + _lambda * sum(neu_activ)."""
    assert inputs.shape == targets.shape
    n_elems = inputs.size
    inv_two_n = 1.0 / (2.0 * n_elems)

    x_flat = inputs.reshape(-1)
    t_flat = targets.reshape(-1)

    rows_total = n_elems // _LANES
    n_main = rows_total * _LANES

    # Lane-ragged tail (< 128 elements): tiny, pure-JAX.
    tail_sq = 0.0
    if n_main < n_elems:
        xt = x_flat[n_main:].astype(jnp.float32)
        tt = t_flat[n_main:].astype(jnp.float32)
        tail_sq = jnp.sum((tt - xt) ** 2)

    # Regularizer + lambda handled in the wrapper: works with traced _lambda,
    # and keeps kernel VMEM independent of neu_activ's size.
    reg_term = _lambda * jnp.sum(neu_activ, dtype=jnp.float32)

    if rows_total == 0:  # everything fit in the tail
        return tail_sq * inv_two_n + reg_term

    # Lane-dense 2-D views in native dtype (free reshape in the aligned case).
    if n_main < n_elems:
        x2d = x_flat[:n_main].reshape(rows_total, _LANES)
        t2d = t_flat[:n_main].reshape(rows_total, _LANES)
    else:
        x2d = x_flat.reshape(rows_total, _LANES)
        t2d = t_flat.reshape(rows_total, _LANES)

    sublane = _sublane_multiple(inputs.dtype)

    # Block sizing: aim for a 2-way split, blocks capped at 2 MiB (f32) per
    # operand, sublane-aligned for the input dtype.
    block_rows = min(_round_up(pl.cdiv(rows_total, 2), sublane), _MAX_BLOCK_ROWS)
    total_blocks = pl.cdiv(rows_total, block_rows)

    # 2-way TensorCore split (v7x megacore) only when it divides evenly, so no
    # block index ever points fully out of bounds.  No-op on v5e/v6e.
    ncores = 2 if (total_blocks % 2 == 0 and total_blocks >= 2) else 1
    steps_per_core = total_blocks // ncores

    need_mask = total_blocks * block_rows > rows_total

    kernel = functools.partial(
        _sqerr_kernel,
        block_rows=block_rows,
        steps_per_core=steps_per_core,
        rows_total=rows_total,
        need_mask=need_mask)

    itemsize = jnp.dtype(inputs.dtype).itemsize
    partials = pl.pallas_call(
        kernel,
        out_shape=jax.ShapeDtypeStruct((ncores, 8, _LANES), jnp.float32),
        grid=(ncores, steps_per_core),
        in_specs=[
            # TODO(synk): sweep pipeline_mode=pl.Buffered(3) on hardware.
            pl.BlockSpec((block_rows, _LANES),
                         lambda c, i: (c * steps_per_core + i, 0)),
            pl.BlockSpec((block_rows, _LANES),
                         lambda c, i: (c * steps_per_core + i, 0)),
        ],
        out_specs=pl.BlockSpec((1, 8, _LANES), lambda c, i: (c, 0, 0)),
        scratch_shapes=[pltpu.VMEM((8, _LANES), jnp.float32)],
        compiler_params=pltpu.CompilerParams(
            dimension_semantics=("parallel", "arbitrary"),
            vmem_limit_bytes=32 << 20),
        cost_estimate=pl.CostEstimate(
            flops=3 * n_main,
            transcendentals=0,
            bytes_accessed=2 * n_main * itemsize + ncores * 8 * _LANES * 4),
    )(x2d, t2d)

    sq_sum = jnp.sum(partials) + tail_sq
    return sq_sum * inv_two_n + reg_term


if __name__ == "__main__":
    key = jax.random.PRNGKey(0)
    k1, k2, k3 = jax.random.split(key, 3)

    # Small shapes consistent with the module's forward (any-shape tensors).
    inputs = jax.random.normal(k1, (2, 4, 16, 16), dtype=jnp.float32)
    targets = jax.random.normal(k2, (2, 4, 16, 16), dtype=jnp.float32)
    neu_activ = jax.random.uniform(k3, (2, 32), dtype=jnp.float32)
    _lambda = 0.01

    loss = custom_loss(inputs, targets, neu_activ, _lambda)
    jax.block_until_ready(loss)

    # Pure-JAX reference check.
    ref = jnp.mean((targets - inputs) ** 2) / 2 + _lambda * jnp.sum(neu_activ)
    assert jnp.allclose(loss, ref, rtol=1e-5, atol=1e-5), (loss, ref)

    print("KERNEL_OK")
</pallas_src>

<mosaic_0001>
module attributes {stable_mosaic.version = 11 : i64} {
  func.func @_sqerr_kernel(%arg0: i32, %arg1: i32, %arg2: memref<8x128xf32, #tpu.memory_space<vmem>>, %arg3: memref<8x128xf32, #tpu.memory_space<vmem>>, %arg4: memref<1x8x128xf32, #tpu.memory_space<vmem>>, %arg5: memref<8x128xf32, #tpu.memory_space<vmem>>) attributes {dimension_semantics = [#tpu.dimension_semantics<parallel>, #tpu.dimension_semantics<arbitrary>], iteration_bounds = array<i64: 2, 1>, scalar_prefetch = 0 : i64, scratch_operands = 1 : i64, tpu.core_type = #tpu.core_type<tc>, window_params = [{transform_indices = @transform_0, window_bounds = array<i64: 8, 128>}, {transform_indices = @transform_1, window_bounds = array<i64: 8, 128>}, {transform_indices = @transform_2, window_bounds = array<i64: 1, 8, 128>}]} {
    %c0_i32 = arith.constant 0 : i32
    %0 = arith.cmpi eq, %arg1, %c0_i32 : i32
    %1 = arith.extui %0 : i1 to i32
    %c0_i32_0 = arith.constant 0 : i32
    %2 = arith.cmpi ne, %1, %c0_i32_0 : i32
    scf.if %2 {
      %cst_10 = arith.constant 0.000000e+00 : f32
      %15 = vector.broadcast %cst_10 : f32 to vector<8x128xf32>
      %c0_11 = arith.constant 0 : index
      %c0_12 = arith.constant 0 : index
      %16 = vector.load %arg5[%c0_11, %c0_12] : memref<8x128xf32, #tpu.memory_space<vmem>>, vector<8x128xf32>
      tpu.vector_store %arg5[%c0_11, %c0_12], %15 {strides = array<i32>} : memref<8x128xf32, #tpu.memory_space<vmem>>, vector<8x128xf32>,
    } else {
    }
    %c0 = arith.constant 0 : index
    %c0_1 = arith.constant 0 : index
    %3 = vector.load %arg2[%c0, %c0_1] : memref<8x128xf32, #tpu.memory_space<vmem>>, vector<8x128xf32>
    %c0_2 = arith.constant 0 : index
    %c0_3 = arith.constant 0 : index
    %4 = vector.load %arg3[%c0_2, %c0_3] : memref<8x128xf32, #tpu.memory_space<vmem>>, vector<8x128xf32>
    %5 = arith.subf %4, %3 : vector<8x128xf32>
    %6 = arith.mulf %5, %5 : vector<8x128xf32>
    %c0_4 = arith.constant 0 : index
    %c0_5 = arith.constant 0 : index
    %7 = vector.load %arg5[%c0_4, %c0_5] : memref<8x128xf32, #tpu.memory_space<vmem>>, vector<8x128xf32>
    %8 = vector.shape_cast %6 : vector<8x128xf32> to vector<1x8x128xf32>
    %cst = arith.constant dense<0.000000e+00> : vector<8x128xf32>
    %9 = vector.multi_reduction <add>, %8, %cst [0] : vector<1x8x128xf32> to vector<8x128xf32>
    %10 = arith.addf %7, %9 : vector<8x128xf32>
    %c0_6 = arith.constant 0 : index
    %c0_7 = arith.constant 0 : index
    %11 = vector.load %arg5[%c0_6, %c0_7] : memref<8x128xf32, #tpu.memory_space<vmem>>, vector<8x128xf32>
    tpu.vector_store %arg5[%c0_6, %c0_7], %10 {strides = array<i32>} : memref<8x128xf32, #tpu.memory_space<vmem>>, vector<8x128xf32>,
    %c0_i32_8 = arith.constant 0 : i32
    %12 = arith.cmpi eq, %arg1, %c0_i32_8 : i32
    %13 = arith.extui %12 : i1 to i32
    %c0_i32_9 = arith.constant 0 : i32
    %14 = arith.cmpi ne, %13, %c0_i32_9 : i32
    scf.if %14 {
      %c0_10 = arith.constant 0 : index
      %c0_11 = arith.constant 0 : index
      %15 = vector.load %arg5[%c0_10, %c0_11] : memref<8x128xf32, #tpu.memory_space<vmem>>, vector<8x128xf32>
      %16 = vector.shape_cast %15 : vector<8x128xf32> to vector<1x8x128xf32>
      %c0_12 = arith.constant 0 : index
      %c0_13 = arith.constant 0 : index
      %c0_14 = arith.constant 0 : index
      %17 = vector.load %arg4[%c0_12, %c0_13, %c0_14] : memref<1x8x128xf32, #tpu.memory_space<vmem>>, vector<1x8x128xf32>
      tpu.vector_store %arg4[%c0_12, %c0_13, %c0_14], %16 {strides = array<i32>} : memref<1x8x128xf32, #tpu.memory_space<vmem>>, vector<1x8x128xf32>,
    } else {
    }
    return
  }
  func.func @transform_0(%arg0: i32, %arg1: i32) -> (i32, i32) {
    %c1_i32 = arith.constant 1 : i32
    %0 = arith.muli %arg0, %c1_i32 : i32
    %1 = arith.addi %0, %arg1 : i32
    %c0_i32 = arith.constant 0 : i32
    %c0_i32_0 = arith.constant 0 : i32
    return %1, %c0_i32 : i32, i32
  }
  func.func @transform_1(%arg0: i32, %arg1: i32) -> (i32, i32) {
    %c1_i32 = arith.constant 1 : i32
    %0 = arith.muli %arg0, %c1_i32 : i32
    %1 = arith.addi %0, %arg1 : i32
    %c0_i32 = arith.constant 0 : i32
    %c0_i32_0 = arith.constant 0 : i32
    return %1, %c0_i32 : i32, i32
  }
  func.func @transform_2(%arg0: i32, %arg1: i32) -> (i32, i32, i32) {
    %c0_i32 = arith.constant 0 : i32
    %c0_i32_0 = arith.constant 0 : i32
    %c0_i32_1 = arith.constant 0 : i32
    return %arg0, %c0_i32, %c0_i32_0 : i32, i32, i32
  }
}

</mosaic_0001>

<bundles_post_ra>
// kernel: tpu_custom_call.1
= control target key start
LH: loop header
LB: loop body
LE: loop exit
PB: predicated region body
PF: predicated region fallthrough
CT: control target
= control target key end

     0   :  { %7 = vsyncpa [#allocation4], 0  ;;  %s731_s0 = inlined_call_operand.hbm [shape: f32[16,128], index: 0, kind: input, shape index: {}]   ;;  %s732_s1 = inlined_call_operand.hbm [shape: f32[16,128], index: 1, kind: input, shape index: {}]   ;;  %s733_s2 = inlined_call_operand.hbm [shape: f32[2,8,128], index: 2, kind: output, shape index: {}]  }
   0x1   :  { %9 = vsyncpa [#allocation4 + $0x1], 0 }
   0x2   :  { %10 = vsyncpa [#allocation7], 0 }
   0x3   :  { %12 = vsyncpa [#allocation7 + $0x1], 0 }
   0x4   :  { %13 = vsyncpa [#allocation5], 0 }
   0x5   :  { %15 = vsyncpa [#allocation5 + $0x1], 0  ;;  %s603_s9 = smov 0   ;;  %s605_s10 = smov 0  }
   0x6   :  { %s607_s11 = smov 0   ;;  %s609_s12 = smov 0  }
   0x7   :  { %s611_s13 = smov 0   ;;  %s613_s14 = smov 0  }
   0x8 LB: > { %s357_s15 = sadd.s32 4294967295, %s586_s14   ;;  %s358_s16 = sadd.s32 4294967294, %s586_s14   ;;  %s586_s14 = sphi %s613_s14, %s21_s14   ;;  %s582_s13 = sphi %s611_s13, %s742_s13   ;;  %s578_s12 = sphi %s609_s12, %s741_s12   ;;  %s574_s11 = sphi %s607_s11, %s740_s11   ;;  %s570_s10 = sphi %s605_s10, %s739_s10   ;;  %s566_s9 = sphi %s603_s9, %s738_s9  }
   0x9   : > { %s33_s17 = sadd.s32 1, %s582_s13  ;;  %s42_s18 = sadd.s32 1, %s574_s11 }
   0xa   : > { %p35_p0 = scmp.ge.s32.totalorder %s33_s17, 2  ;;  %p49_p1 = scmp.ne.s32.totalorder %s574_s11, %s570_s10 }
   0xb   : > { %p50_p2 = scmp.eq.s32.totalorder %s586_s14, 0  ;;  %p55_p3 = scmp.ne.s32.totalorder %s570_s10, %s566_s9 }
   0xc   : > { %s744_s17 = smov (%p35_p0, %s33_s17), 0  ;;  %p56_p5 = scmp.eq.s32.totalorder %s357_s15, 0 }
   0xd   : > { %p644_p4 = por %p50_p2, %p49_p1  ;;  %s39_s20 = ssub.s32 %s582_s13, %s744_s17 }
   0xe   : > { %p107_p6 = scmp.eq.s32.totalorder %s357_s15, 1  ;;  %p40_p7 = scmp.eq.s32.totalorder %s39_s20, 0 }
   0xf   : > { %p650_p8 = por %p56_p5, %p55_p3  ;;  %p113_p10 = scmp.eq.s32.totalorder %s358_s16, 1 }
  0x10   : > { %p654_p9 = por %p107_p6, %p49_p1  ;;  %p360_p12 = scmp.ge.s32.totalorder %s586_s14, 2 }
  0x11   : > { %s659_s23 = scalar_select %p40_p7, %s574_s11, %s42_s18  }
  0x12   : > { %p661_p11 = por %p113_p10, %p55_p3  ;;  %p390_p13 = scmp.lt.s32.totalorder %s586_s14, 2 }
  0x13   : > { %s133_s25 = sand.u32 1, %s574_s11   ;;  %s362_s27 = sshll.u32 %s582_s13, 3 }
  0x14   : > { %s361_s26 = sshll.u32 %s133_s25, 3  ;;  %s142_s30 = scalar_lea.hbm %s731_s0, %s362_s27 }
  0x15   : > { %s137_s3 = scalar_lea.vmem [#allocation3], %s361_s26  ;;  %s144_s5 = sshll.u32 %s142_s30, 4  ;;  %s145_s5 = int_to_ptr.hbm [resolvable:$true] %s144_s5 }
  0x16   : > { %s146_s4 = sshll.u32 %s137_s3, 4  ;;  %p380_p0 = pnand %p390_p13, %p644_p4  ;;  %s147_s4 = int_to_ptr.vmem [resolvable:$true] %s146_s4 }
  0x17   : > { %p365_p1 = scmp.ge.s32.totalorder %s586_s14, 1  ;;  %p171_p2 = scmp.lt.s32.totalorder %s586_s14, 3 }
  0x18   : > { %s134_s6 = scalar_lea.sflag [#allocation4], %s133_s25  ;;  %s162_s15 = scalar_lea.hbm %s732_s1, %s362_s27 }
  0x19   : > { %382 = dma.hbm_to_vmem [thread:$0]  (!%p380_p0), %s145_s5, 128, %s147_s4, %s134_s6  }
  0x1a   : > { %p172_p3 = pnand %p365_p1, %p171_p2  ;;  %s157_s16 = scalar_lea.vmem [#allocation6], %s361_s26 }
  0x1b   : > { %s166_s18 = sshll.u32 %s157_s16, 4  ;;  %s164_s20 = sshll.u32 %s162_s15, 4  ;;  %s167_s18 = int_to_ptr.vmem [resolvable:$true] %s166_s18  ;;  %s165_s20 = int_to_ptr.hbm [resolvable:$true] %s164_s20 }
  0x1c   : > { %s154_s28 = scalar_lea.sflag [#allocation7], %s133_s25  ;;  %175 = sbr.rel (%p172_p3) target bundleno = 51 (0x33), region = 28 }
  0x1d   : > { %385 = dma.hbm_to_vmem [thread:$0]  (!%p380_p0), %s165_s20, 128, %s167_s18, %s154_s28  }
  0x1e   : > { %s680_s19 = sand.u32 (!%p172_p3), 1, %s570_s10  }
  0x1f   : > { %s366_s29 = sshll.u32 (!%p172_p3), %s680_s19, 3  ;;  %s178_s30 = scalar_lea.sflag (!%p172_p3), [#allocation4], %s680_s19 }
  0x20   : > { %s181_s3 = scalar_lea.vmem (!%p172_p3), [#allocation3], %s366_s29 }
  0x21   : > { %553 = dma.done.wait (%p650_p8), %s178_s30, 128  }
  0x22   : > { %555 = vsyncadd (%p650_p8), %s178_s30, 4294967168  ;;  %s188_s26 = scalar_lea.sflag [#allocation7], %s680_s19  ;;  %s191_s25 = scalar_lea.vmem [#allocation6], %s366_s29 }
  0x23   : > { %557 = dma.done.wait (%p650_p8), %s188_s26, 128  }
  0x24   : > { %559 = vsyncadd (%p650_p8), %s188_s26, 4294967168  ;;  %s370_s27 = sshll.u32 %s578_s12, 3  ;;  %v225_v0 = vld [vmem:[%s181_s3] sm:$0xff]  ;;  %v226_v1 = vld [vmem:[%s191_s25] sm:$0xff]  ;;  %s217_s7 = scalar_lea.vmem [#allocation8], %s366_s29 }
  0x25   : > { %s249_s6 = scalar_lea.hbm %s733_s2, %s370_s27  ;;  %s251_s8 = sshll.u32 %s217_s7, 4  ;;  %v227_v2 = vsub.f32 %v226_v1, %v225_v0  ;;  %s252_s8 = int_to_ptr.vmem [resolvable:$true] %s251_s8 }
  0x26   : > { %s253_s15 = sshll.u32 %s249_s6, 4  ;;  %s239_s21 = scalar_lea.sflag [#allocation5], %s680_s19  ;;  %s254_s15 = int_to_ptr.hbm [resolvable:$true] %s253_s15 }
  0x27   : > { %v228_v3 = vmul.f32 %v227_v2, %v227_v2  ;;  %s514_s16 = sshra.s32 %s254_s15, 4  ;;  %s520_s28 = scalar_lea.hbm %s733_s2, 16  ;;  %s515_s16 = int_to_ptr.hbm [resolvable:$true] %s514_s16 }
  0x28   : > { %s516_s18 = scalar_lea.hbm %s515_s16, 8  ;;  %p521_p7 = scmp.lt.s32.totalorder %s515_s16, %s733_s2 }
  0x29   : > { %237 = vst [vmem:[%s217_s7] sm:$0xff] %v228_v3  ;;  %p517_p4 = scmp.ne.s32.totalorder %s515_s16, %s516_s18  ;;  %p522_p8 = scmp.lt.s32.totalorder %s520_s28, %s516_s18 }
  0x2b   : > { %p518_p5 = pnand %p517_p4, %p654_p9  ;;  %p523_p10 = por %p522_p8, %p521_p7 }
  0x2d   : > { %p519_p6 = pneg %p518_p5 }
  0x2f   : > { %p524_p13 = pnand %p523_p10, %p519_p6 }
  0x31   : > { %527 = shalt.err (!%p524_p13)
}
  0x32   : > { %377 = dma.vmem_to_hbm [thread:$0]  (%p654_p9), %s252_s8, 128, %s254_s15, %s239_s21  }
  0x33 PF: > { %s265_s19 = sand.u32 1, %s566_s9   ;;  %p387_p0 = pnand %p360_p12, %p661_p11 }
  0x34   : > { %s266_s3 = scalar_lea.sflag [#allocation5], %s265_s19 }
  0x35   : > { %p388_p1 = pneg %p387_p0 }
  0x37   : > { %561 = dma.done.wait (%p388_p1), %s266_s3, 128  }
  0x38   : > { %563 = vsyncadd (%p388_p1), %s266_s3, 4294967168  ;;  %s21_s14 = sadd.s32 1, %s586_s14   ;;  %s738_s9 = smov %s570_s10 }
  0x39   : > { %p18_p2 = scmp.ge.s32.totalorder %s21_s14, 4   ;;  %s739_s10 = smov %s574_s11 }
  0x3a   : > { %s740_s11 = smov %s659_s23  ;;  %s741_s12 = smov %s582_s13 }
  0x3b   : > { %s742_s13 = smov %s744_s17  ;;  %20 = sbr.rel (!%p18_p2) target bundleno = 8 (0x8), region = 94 }
  0x40   :  { %272 = vsyncpa [#allocation4], 1 }
  0x41   :  { %274 = vsyncpa [#allocation4 + $0x1], 1 }
  0x42   :  { %275 = vsyncpa [#allocation7], 1 }
  0x43   :  { %277 = vsyncpa [#allocation7 + $0x1], 1 }
  0x44   :  { %278 = vsyncpa [#allocation5], 1 }
  0x45   :  { %280 = vsyncpa [#allocation5 + $0x1], 1 }

</bundles_post_ra>
